<compile_context>
chip_gen: v7x
topology: tpu7x:2x2x1
jax: 0.10.0
libtpu: 0.0.40
codegen_flags: <defaults>
</compile_context>

<pallas_src>
import jax
import jax.numpy as jnp
from jax.experimental import pallas as pl
from jax.experimental.pallas import tpu as pltpu


_BYPASS_TOTAL_BYTES = 512 * 1024  # below this, plain XLA fusion beats kernel launch cost


# ----------------------------------------------------------------------------- utils
def _divisors(n):
    ds = set()
    i = 1
    while i * i <= n:
        if n % i == 0:
            ds.add(i)
            ds.add(n // i)
        i += 1
    return sorted(ds)


def _budgets():
    """(per-array block byte budget, vmem_limit_bytes), tuned per TPU generation."""
    vmem = None
    try:
        vmem = getattr(pltpu.get_tpu_info(), "vmem_capacity_bytes", None)
    except Exception:
        vmem = None
    if vmem is not None and vmem >= 100 * 1024 * 1024:
        # v5e / v6e: 128 MiB physical VMEM -> 8 MiB/array blocks, 64 MiB scoped limit
        # (v5e's scoped default is only 16 MiB, so the explicit limit is mandatory).
        return 8 * 1024 * 1024, 64 * 1024 * 1024
    # v7x (64 MiB VMEM) or unknown: 5 MiB/array blocks under a 48 MiB scoped limit
    # (3 arrays x 2 buffers x 5 MiB = 30 MiB + pos + slack).
    return 5 * 1024 * 1024, 48 * 1024 * 1024


# --------------------------------------------------------------------------- kernels
def _jpe_flat_kernel(pos_ref, t_ref, j_ref, o_ref):
    # pos_ref: (1, TL) f32 positional ramp, broadcast over sublanes (free on the VPU).
    o_ref[...] = ((t_ref[...] + j_ref[...]) * pos_ref[...]).astype(o_ref.dtype)


def _jpe_rows_kernel(pos_ref, t_ref, j_ref, o_ref):
    # pos_ref: (TR, 1) f32 per-row position, broadcast over lanes.
    o_ref[...] = ((t_ref[...] + j_ref[...]) * pos_ref[...]).astype(o_ref.dtype)


def _jpe_3d_kernel(t_ref, j_ref, o_ref):
    # Block covers the full (S, F) trailing dims, so the iota along axis=1 is 0..S-1.
    combined = t_ref[...] + j_ref[...]
    pos = jax.lax.broadcasted_iota(jnp.float32, combined.shape, 1)
    o_ref[...] = (combined * pos).astype(o_ref.dtype)


# --------------------------------------------------------------------------- planners
def _plan_flat(b, l, itemsize, budget):
    """Tile (B, L): lane-first growth, then sublanes. Returns (tb, tl) or None."""
    tb0 = 8 if b % 8 == 0 else b  # sublane tile must be a multiple of 8 or the full dim
    m = l // 128
    lane_divs = [128 * k for k in _divisors(m)]
    feasible = [d for d in lane_divs if tb0 * d * itemsize <= budget]
    if feasible:
        tl = max(feasible)
    else:
        tl = 128
        if tb0 * tl * itemsize > budget:
            return None  # cannot build a legal block inside VMEM; caller falls back
    tb = tb0
    if b % 8 == 0:
        for cand in sorted(d for d in _divisors(b) if d % 8 == 0):
            if cand * tl * itemsize <= budget:
                tb = cand
    # v7x: guarantee >= 2 steps along a "parallel" axis so both TensorCores get work.
    if b // tb == 1 and l // tl == 1:
        if (tl // 2) % 128 == 0:
            tl //= 2
        elif tb % 16 == 0:
            tb //= 2
    return tb, tl


def _plan_rows(r, f, itemsize, budget):
    """Tile (R, F)=(B*S, F) with F % 128 == 0. Returns (tr, tf) or None."""
    tf = f
    if 8 * tf * itemsize > budget:  # enormous feature dim: shrink the lane tile
        m = f // 128
        feas = [128 * k for k in _divisors(m) if 8 * 128 * k * itemsize <= budget]
        tf = max(feas) if feas else 128
    if r % 8 == 0:
        tr = 8
        for cand in sorted(d for d in _divisors(r) if d % 8 == 0):
            if cand * tf * itemsize <= budget:
                tr = cand
    else:
        tr = r  # sublane tile must equal the full dim
        if tr * tf * itemsize > budget:
            return None
    if r // tr == 1 and f // tf == 1:
        if tr % 16 == 0:
            tr //= 2
        elif (tf // 2) % 128 == 0:
            tf //= 2
    return tr, tf


def _plan_3d(b, s, f, itemsize, budget):
    """Tile (B, S, F) with full (S, F) trailing block. Returns tb or None."""
    block = s * f * itemsize
    if block > budget:
        return None
    tb = 1
    for cand in _divisors(b):
        if cand * block <= budget:
            tb = cand
    return tb


# --------------------------------------------------------------------------- runners
def _run_flat(t, j, b, s, f, budget, vmem_limit):
    l = s * f
    dtype = t.dtype
    itemsize = jnp.dtype(dtype).itemsize
    plan = _plan_flat(b, l, itemsize, budget)
    if plan is None:
        return None
    tb, tl = plan
    t2 = t.reshape(b, l)
    j2 = j.reshape(b, l)
    # Flattened lane index q of a row has sequence position q // f (kept in f32).
    pos_row = (jnp.arange(l, dtype=jnp.int32) // f).astype(jnp.float32).reshape(1, l)
    # Lane axis OUTER: the pos block index (0, lj) is constant across the inner batch
    # loop, so Pallas keeps it resident instead of re-DMAing it every step.
    grid = (l // tl, b // tb)
    out2 = pl.pallas_call(
        _jpe_flat_kernel,
        out_shape=jax.ShapeDtypeStruct((b, l), dtype),
        grid_spec=pl.GridSpec(
            grid=grid,
            in_specs=[
                pl.BlockSpec((1, tl), lambda lj, bi: (0, lj)),   # positional ramp
                pl.BlockSpec((tb, tl), lambda lj, bi: (bi, lj)),  # torque
                pl.BlockSpec((tb, tl), lambda lj, bi: (bi, lj)),  # joint
            ],
            out_specs=pl.BlockSpec((tb, tl), lambda lj, bi: (bi, lj)),
        ),
        compiler_params=pltpu.CompilerParams(
            dimension_semantics=("parallel", "parallel"),
            vmem_limit_bytes=vmem_limit,
        ),
    )(pos_row, t2, j2)
    return out2.reshape(b, s, f)


def _run_rows(t, j, b, s, f, budget, vmem_limit):
    r = b * s
    dtype = t.dtype
    itemsize = jnp.dtype(dtype).itemsize
    plan = _plan_rows(r, f, itemsize, budget)
    if plan is None:
        return None
    tr, tf = plan
    t2 = t.reshape(r, f)
    j2 = j.reshape(r, f)
    # Row index q = b*S + s  ->  position s = q % S  (tiny (R, 1) column, f32).
    pos_col = (jnp.arange(r, dtype=jnp.int32) % s).astype(jnp.float32).reshape(r, 1)
    # Row axis OUTER: pos block index (ri, 0) is constant across the inner F loop.
    grid = (r // tr, f // tf)
    out2 = pl.pallas_call(
        _jpe_rows_kernel,
        out_shape=jax.ShapeDtypeStruct((r, f), dtype),
        grid_spec=pl.GridSpec(
            grid=grid,
            in_specs=[
                pl.BlockSpec((tr, 1), lambda ri, fj: (ri, 0)),    # per-row position
                pl.BlockSpec((tr, tf), lambda ri, fj: (ri, fj)),  # torque
                pl.BlockSpec((tr, tf), lambda ri, fj: (ri, fj)),  # joint
            ],
            out_specs=pl.BlockSpec((tr, tf), lambda ri, fj: (ri, fj)),
        ),
        compiler_params=pltpu.CompilerParams(
            dimension_semantics=("parallel", "parallel"),
            vmem_limit_bytes=vmem_limit,
        ),
    )(pos_col, t2, j2)
    return out2.reshape(b, s, f)


def _run_3d(t, j, b, s, f, budget, vmem_limit):
    dtype = t.dtype
    itemsize = jnp.dtype(dtype).itemsize
    tb = _plan_3d(b, s, f, itemsize, budget)
    if tb is None:
        return None
    blk = (tb, s, f)
    return pl.pallas_call(
        _jpe_3d_kernel,
        out_shape=jax.ShapeDtypeStruct((b, s, f), dtype),
        grid_spec=pl.GridSpec(
            grid=(b // tb,),
            in_specs=[
                pl.BlockSpec(blk, lambda i: (i, 0, 0)),
                pl.BlockSpec(blk, lambda i: (i, 0, 0)),
            ],
            out_specs=pl.BlockSpec(blk, lambda i: (i, 0, 0)),
        ),
        compiler_params=pltpu.CompilerParams(
            dimension_semantics=("parallel",),
            vmem_limit_bytes=vmem_limit,
        ),
    )(t, j)


def _jnp_forward(t, j):
    s = t.shape[1]
    pos = jnp.arange(s, dtype=jnp.float32)[None, :, None]
    return ((t + j) * pos).astype(t.dtype)


# --------------------------------------------------------------------------- wrapper
def joint_positional_encoding(torque_seq, joint_seq, *, force_pallas=False):
    """Pallas TPU implementation of JointPositionalEncoding.forward.

    torque_seq, joint_seq: (batch, seq_len, feature_dim) arrays (same shape/dtype).
    Returns (batch, seq_len, feature_dim).
    """
    assert torque_seq.shape == joint_seq.shape
    assert torque_seq.dtype == joint_seq.dtype
    b, s, f = torque_seq.shape
    itemsize = jnp.dtype(torque_seq.dtype).itemsize
    l = s * f
    total_bytes = 3 * b * l * itemsize

    # Tiny inputs: kernel-launch/pipeline-priming overhead dwarfs the HBM traffic.
    if total_bytes == 0 or (not force_pallas and total_bytes < _BYPASS_TOTAL_BYTES):
        return _jnp_forward(torque_seq, joint_seq)

    budget, vmem_limit = _budgets()

    # 1) (B*S, F) row layout: full 8-sublane tiles when B is small / not 8-aligned.
    if f % 128 == 0 and (b < 8 or b % 8 != 0):
        out = _run_rows(torque_seq, joint_seq, b, s, f, budget, vmem_limit)
        if out is not None:
            return out

    if l % 128 == 0:
        # 2) lane-dense flat (B, S*F) layout.
        out = _run_flat(torque_seq, joint_seq, b, s, f, budget, vmem_limit)
        if out is not None:
            return out
        if f % 128 == 0:
            out = _run_rows(torque_seq, joint_seq, b, s, f, budget, vmem_limit)
            if out is not None:
                return out
    else:
        # 3) batch-tiled 3-D fallback for non-128-aligned rows.
        out = _run_3d(torque_seq, joint_seq, b, s, f, budget, vmem_limit)
        if out is not None:
            return out

    # 4) Safety net: shapes no legal VMEM-resident tiling fits (e.g. huge prime batch
    #    with non-aligned rows) are handled correctly by XLA.
    return _jnp_forward(torque_seq, joint_seq)


def _reference(torque_seq, joint_seq):
    _, s, _ = torque_seq.shape
    pos = jnp.arange(s, dtype=jnp.float32)[None, :, None]
    return ((torque_seq + joint_seq) * pos).astype(torque_seq.dtype)


if __name__ == "__main__":
    key = jax.random.PRNGKey(0)

    def check(shape):
        k1, k2 = jax.random.split(jax.random.fold_in(key, shape[0] * shape[1] * shape[2]))
        t = jax.random.normal(k1, shape, dtype=jnp.float32)
        j = jax.random.normal(k2, shape, dtype=jnp.float32)
        out = joint_positional_encoding(t, j, force_pallas=True)
        out = jax.block_until_ready(out)
        ref = _reference(t, j)
        assert out.shape == shape
        assert jnp.allclose(out, ref, atol=1e-6, rtol=1e-6)

    # Flat lane-dense path (S*F % 128 == 0, F % 128 != 0).
    check((2, 8, 32))
    # (B*S, F) row layout path (F % 128 == 0, small batch).
    check((2, 16, 128))
    # 3-D fallback path (S*F % 128 != 0).
    check((2, 8, 24))

    print("KERNEL_OK")
</pallas_src>

<mosaic_0001>
module attributes {stable_mosaic.version = 11 : i64} {
  func.func @_jpe_flat_kernel(%arg0: i32, %arg1: i32, %arg2: memref<1x128xf32, #tpu.memory_space<vmem>>, %arg3: memref<2x128xf32, #tpu.memory_space<vmem>>, %arg4: memref<2x128xf32, #tpu.memory_space<vmem>>, %arg5: memref<2x128xf32, #tpu.memory_space<vmem>>) attributes {dimension_semantics = [#tpu.dimension_semantics<parallel>, #tpu.dimension_semantics<parallel>], iteration_bounds = array<i64: 2, 1>, scalar_prefetch = 0 : i64, scratch_operands = 0 : i64, tpu.core_type = #tpu.core_type<tc>, window_params = [{transform_indices = @transform_0, window_bounds = array<i64: 1, 128>}, {transform_indices = @transform_1, window_bounds = array<i64: 2, 128>}, {transform_indices = @transform_2, window_bounds = array<i64: 2, 128>}, {transform_indices = @transform_3, window_bounds = array<i64: 2, 128>}]} {
    %c0 = arith.constant 0 : index
    %c0_0 = arith.constant 0 : index
    %0 = vector.load %arg3[%c0, %c0_0] : memref<2x128xf32, #tpu.memory_space<vmem>>, vector<2x128xf32>
    %c0_1 = arith.constant 0 : index
    %c0_2 = arith.constant 0 : index
    %1 = vector.load %arg4[%c0_1, %c0_2] : memref<2x128xf32, #tpu.memory_space<vmem>>, vector<2x128xf32>
    %2 = arith.addf %0, %1 : vector<2x128xf32>
    %c0_3 = arith.constant 0 : index
    %c0_4 = arith.constant 0 : index
    %3 = vector.load %arg2[%c0_3, %c0_4] : memref<1x128xf32, #tpu.memory_space<vmem>>, vector<1x128xf32>
    %4 = vector.broadcast %3 : vector<1x128xf32> to vector<2x128xf32>
    %5 = arith.mulf %2, %4 : vector<2x128xf32>
    %c0_5 = arith.constant 0 : index
    %c0_6 = arith.constant 0 : index
    %6 = vector.load %arg5[%c0_5, %c0_6] : memref<2x128xf32, #tpu.memory_space<vmem>>, vector<2x128xf32>
    tpu.vector_store %arg5[%c0_5, %c0_6], %5 {strides = array<i32>} : memref<2x128xf32, #tpu.memory_space<vmem>>, vector<2x128xf32>,
    return
  }
  func.func @transform_0(%arg0: i32, %arg1: i32) -> (i32, i32) {
    %c0_i32 = arith.constant 0 : i32
    %c0_i32_0 = arith.constant 0 : i32
    return %c0_i32, %arg0 : i32, i32
  }
  func.func @transform_1(%arg0: i32, %arg1: i32) -> (i32, i32) {
    %c0_i32 = arith.constant 0 : i32
    return %arg1, %arg0 : i32, i32
  }
  func.func @transform_2(%arg0: i32, %arg1: i32) -> (i32, i32) {
    %c0_i32 = arith.constant 0 : i32
    return %arg1, %arg0 : i32, i32
  }
  func.func @transform_3(%arg0: i32, %arg1: i32) -> (i32, i32) {
    %c0_i32 = arith.constant 0 : i32
    return %arg1, %arg0 : i32, i32
  }
}

</mosaic_0001>

<bundles_post_ra>
// kernel: tpu_custom_call.1
= control target key start
LH: loop header
LB: loop body
LE: loop exit
PB: predicated region body
PF: predicated region fallthrough
CT: control target
= control target key end

     0   :  { %8 = vsyncpa [#allocation3], 0  ;;  %s893_s0 = inlined_call_operand.hbm [shape: f32[1,256], index: 0, kind: input, shape index: {}]   ;;  %s894_s1 = inlined_call_operand.hbm [shape: f32[2,256], index: 1, kind: input, shape index: {}]   ;;  %s895_s2 = inlined_call_operand.vmem [shape: f32[2,256], index: 2, kind: input, shape index: {}]   ;;  %s896_s3 = inlined_call_operand.hbm [shape: f32[2,256], index: 3, kind: output, shape index: {}]  }
   0x1   :  { %10 = vsyncpa [#allocation3 + $0x1], 0 }
   0x2   :  { %11 = vsyncpa [#allocation6], 0 }
   0x3   :  { %13 = vsyncpa [#allocation6 + $0x1], 0 }
   0x4   :  { %14 = vsyncpa [#allocation4], 0 }
   0x5   :  { %16 = vsyncpa [#allocation4 + $0x1], 0  ;;  %s671_s12 = smov 0   ;;  %s673_s13 = smov 0  }
   0x6   :  { %s675_s14 = smov 0   ;;  %s677_s15 = smov 0  }
   0x7   :  { %s679_s16 = smov 0   ;;  %s681_s17 = smov 0  }
   0x8 LB: > { %s417_s18 = sadd.s32 4294967295, %s646_s17   ;;  %s418_s19 = sadd.s32 4294967294, %s646_s17   ;;  %s646_s17 = sphi %s681_s17, %s22_s17   ;;  %s642_s16 = sphi %s679_s16, %s916_s16   ;;  %s638_s15 = sphi %s677_s15, %s915_s15   ;;  %s634_s14 = sphi %s675_s14, %s914_s14   ;;  %s630_s13 = sphi %s673_s13, %s913_s13   ;;  %s626_s12 = sphi %s671_s12, %s912_s12  }
   0x9   : > { %s34_s20 = sadd.s32 1, %s642_s16  ;;  %s41_s21 = sadd.s32 1, %s634_s14 }
   0xa   : > { %p36_p0 = scmp.ge.s32.totalorder %s34_s20, 2  ;;  %p48_p1 = scmp.ne.s32.totalorder %s634_s14, %s630_s13 }
   0xb   : > { %p49_p2 = scmp.eq.s32.totalorder %s646_s17, 0  ;;  %p54_p3 = scmp.ne.s32.totalorder %s630_s13, %s626_s12 }
   0xc   : > { %s918_s20 = smov (%p36_p0, %s34_s20), 0  ;;  %p55_p5 = scmp.eq.s32.totalorder %s417_s18, 0 }
   0xd   : > { %p712_p4 = por %p49_p2, %p48_p1  ;;  %s38_s23 = ssub.s32 %s642_s16, %s918_s20 }
   0xe   : > { %p136_p6 = scmp.eq.s32.totalorder %s417_s18, 1  ;;  %p39_p7 = scmp.eq.s32.totalorder %s38_s23, 0 }
   0xf   : > { %p718_p8 = por %p55_p5, %p54_p3  ;;  %p142_p10 = scmp.eq.s32.totalorder %s418_s19, 1 }
  0x10   : > { %p722_p9 = por %p136_p6, %p48_p1  ;;  %p450_p13 = scmp.lt.s32.totalorder %s646_s17, 2 }
  0x11   : > { %s900_s24 = scalar_select %p718_p8, 1, 0 }
  0x12   : > { %s901_s25 = scalar_select %p722_p9, 1, 0 }
  0x13   : > { %s727_s26 = scalar_select %p39_p7, %s634_s14, %s41_s21  }
  0x14   : > { %p729_p11 = por %p142_p10, %p54_p3  ;;  %s736_s28 = sand.u32 1, %s634_s14  }
  0x15   : > { %s421_s29 = sshll.u32 %s642_s16, 4  ;;  %s165_s30 = scalar_lea.vmem [#allocation2], %s736_s28 }
  0x16   : > { %s902_s27 = scalar_select %p729_p11, 1, 0 }
  0x17   : > { %s172_s4 = sshll.u32 %s165_s30, 4  ;;  %s743_s7 = scalar_lea.hbm %s893_s0, %s421_s29  ;;  %s745_s4 = int_to_ptr.vmem [resolvable:$true] %s172_s4 }
  0x18   : > { %p749_p0 = pnand %p450_p13, %p712_p4  ;;  %s422_s9 = sshll.u32 %s736_s28, 1 }
  0x19   : > { %s163_s10 = scalar_lea.sflag [#allocation3], %s736_s28  ;;  %s500_s11 = scalar_lea.hbm %s743_s7, 16 }
  0x1a   : > { %p501_p3 = scmp.ne.s32.totalorder %s743_s7, %s500_s11  ;;  %p502_p5 = pneg %p749_p0 }
  0x1b   : > { %s505_s21 = scalar_lea.hbm %s893_s0, 32  ;;  %p506_p4 = scmp.lt.u32.totalorder %s743_s7, %s893_s0 }
  0x1c   : > { %p503_p6 = pnand %p502_p5, %p501_p3  ;;  %p507_p10 = scmp.lt.u32.totalorder %s505_s21, %s500_s11 }
  0x1d   : > { %p509_p12 = scmp.lt.u32.totalorder %s500_s11, %s743_s7 }
  0x1e   : > { %p504_p7 = pneg %p503_p6  ;;  %p508_p13 = por %p507_p10, %p506_p4 }
  0x20   : > { %p510_p1 = por %p509_p12, %p508_p13 }
  0x22   : > { %p511_p2 = pnand %p510_p1, %p504_p7 }
  0x24   : > { %514 = shalt.err (!%p511_p2)
}
  0x25   : > { %s515_s29 = scalar_lea.vmem %s745_s4, 16  ;;  %s648_s30 = smov [#allocation2]  }
  0x26   : > { %p516_p3 = scmp.ne.s32.totalorder %s745_s4, %s515_s29  ;;  %s520_s5 = sshll.u32 %s648_s30, 4  ;;  %s521_s5 = int_to_ptr.vmem [resolvable:$false] %s520_s5 }
  0x27   : > { %s522_s6 = scalar_lea.vmem %s521_s5, 32  ;;  %p523_p9 = scmp.lt.s32.totalorder %s745_s4, %s521_s5 }
  0x28   : > { %p518_p6 = pnand %p516_p3, %p502_p5  ;;  %p524_p4 = scmp.lt.s32.totalorder %s522_s6, %s515_s29 }
  0x2a   : > { %p519_p11 = pneg %p518_p6  ;;  %p525_p10 = por %p524_p4, %p523_p9 }
  0x2c   : > { %p526_p12 = pnand %p525_p10, %p519_p11 }
  0x2e   : > { %529 = shalt.err (!%p526_p12)
}
  0x2f   : > { %442 = dma.hbm_to_vmem [thread:$0]  (!%p749_p0), %s743_s7, 16, %s745_s4, %s163_s10  }
  0x30   : > { %p904_p1 = scmp.lt.s32.totalorder %s646_s17, 3  ;;  %p905_p2 = scmp.ge.s32.totalorder %s646_s17, 1 }
  0x31   : > { %s423_s18 = sshll.u32 %s642_s16, 5  ;;  %s183_s19 = scalar_lea.vmem [#allocation5], %s422_s9 }
  0x32   : > { %p786_p7 = pnand %p905_p2, %p904_p1  ;;  %s192_s21 = sshll.u32 %s183_s19, 4  ;;  %s193_s21 = int_to_ptr.vmem [resolvable:$true] %s192_s21 }
  0x33   : > { %s796_s29 = scalar_lea.hbm %s894_s1, %s423_s18  ;;  %s180_s4 = scalar_lea.sflag [#allocation6], %s736_s28 }
  0x34   : > { %s906_s11 = scalar_select %p786_p7, 1, 0 }
  0x35   : > { %s530_s7 = scalar_lea.hbm %s796_s29, 32  ;;  %s535_s30 = scalar_lea.hbm %s894_s1, 64 }
  0x36   : > { %p531_p9 = scmp.ne.s32.totalorder %s796_s29, %s530_s7  ;;  %p536_p3 = scmp.lt.u32.totalorder %s796_s29, %s894_s1 }
  0x37   : > { %p537_p6 = scmp.lt.u32.totalorder %s535_s30, %s530_s7  ;;  %p539_p10 = scmp.lt.u32.totalorder %s530_s7, %s796_s29 }
  0x38   : > { %p533_p11 = pnand %p531_p9, %p502_p5 }
  0x39   : > { %p538_p4 = por %p537_p6, %p536_p3 }
  0x3a   : > { %p534_p13 = pneg %p533_p11 }
  0x3b   : > { %p540_p12 = por %p539_p10, %p538_p4 }
  0x3d   : > { %p541_p1 = pnand %p540_p12, %p534_p13 }
  0x3f   : > { %544 = shalt.err (!%p541_p1)
}
  0x40   : > { %s545_s28 = scalar_lea.vmem %s193_s21, 32  ;;  %s649_s18 = smov [#allocation5]  }
  0x41   : > { %p546_p2 = scmp.ne.s32.totalorder %s193_s21, %s545_s28  ;;  %s550_s19 = sshll.u32 %s649_s18, 4  ;;  %s551_s19 = int_to_ptr.vmem [resolvable:$false] %s550_s19 }
  0x42   : > { %s552_s22 = scalar_lea.vmem %s551_s19, 64  ;;  %p553_p8 = scmp.lt.s32.totalorder %s193_s21, %s551_s19 }
  0x43   : > { %p548_p9 = pnand %p546_p2, %p502_p5  ;;  %p554_p7 = scmp.lt.s32.totalorder %s552_s22, %s545_s28 }
  0x45   : > { %p549_p11 = pneg %p548_p9  ;;  %p555_p3 = por %p554_p7, %p553_p8 }
  0x47   : > { %p556_p6 = pnand %p555_p3, %p549_p11 }
  0x49   : > { %559 = shalt.err (!%p556_p6)
}
  0x4a   : > { %445 = dma.hbm_to_vmem [thread:$0]  (!%p749_p0), %s796_s29, 32, %s193_s21, %s180_s4  }
  0x4b   : > { %p907_p13 = scmp.ne.s32.totalorder %s906_s11, 0 }
  0x4c   : > { %s821_s23 = sand.u32 (!%p907_p13), 1, %s630_s13   ;;  %p908_p5 = scmp.ne.s32.totalorder (!%p907_p13), %s900_s24, 0 }
  0x4d   : > { %212 = sbr.rel (%p907_p13) target bundleno = 116 (0x74), region = 32  ;;  %s215_s7 = scalar_lea.sflag (!%p907_p13), [#allocation3], %s821_s23 }
  0x4e   : > { %s217_s10 = scalar_lea.vmem (!%p907_p13), [#allocation2], %s821_s23 }
  0x54   : > { %613 = dma.done.wait (%p908_p5), %s215_s7, 16  }
  0x55   : > { %615 = vsyncadd (%p908_p5), %s215_s7, 4294967280  ;;  %s425_s8 = sshll.u32 %s821_s23, 1  ;;  %s223_s21 = scalar_lea.sflag [#allocation6], %s821_s23 }
  0x56   : > { %s226_s11 = scalar_lea.vmem [#allocation5], %s425_s8 }
  0x57   : > { %617 = dma.done.wait (%p908_p5), %s223_s21, 32  }
  0x58   : > { %619 = vsyncadd (%p908_p5), %s223_s21, 4294967264  ;;  %p263_p8 = scmp.lt.s32.totalorder %s638_s15, 1  ;;  %s260_s6 = scalar_lea.vmem [#allocation7], %s425_s8  ;;  %v269_v0 = vld [vmem:[%s226_s11] sm:$0x3] }
  0x59   : > { %s297_s28 = sshll.u32 %s260_s6, 4  ;;  %s430_s18 = sshll.u32 %s638_s15, 5  ;;  %v428_v2 = vld [vmem:[%s217_s10] ss:$0 sm:$0xff]  ;;  %s841_s28 = int_to_ptr.vmem [resolvable:$true] %s297_s28 }
  0x5a   : > { %s264_s29 = scalar_select %p263_p8, %s638_s15, 1 }
  0x5b   : > { %s846_s22 = scalar_lea.hbm %s896_s3, %s430_s18  ;;  %s282_s7 = scalar_lea.sflag [#allocation4], %s821_s23 }
  0x5c   : > { %s427_s4 = sshll.u32 %s264_s29, 1  ;;  %s560_s8 = scalar_lea.vmem %s841_s28, 32 }
  0x5d   : > { %s268_s5 = scalar_lea.vmem %s895_s2, %s427_s4  ;;  %p561_p0 = scmp.ne.s32.totalorder %s841_s28, %s560_s8 }
  0x5e   : > { %v270_v1 = vld [vmem:[%s268_s5] sm:$0x3]  ;;  %p909_p7 = scmp.ne.s32.totalorder %s901_s25, 0  ;;  %s650_s15 = smov [#allocation7]  }
  0x5f   : > { %v271_v3 = vadd.f32 %v270_v1, %v269_v0  ;;  %s564_s10 = sshll.u32 %s650_s15, 4  ;;  %s565_s10 = int_to_ptr.vmem [resolvable:$false] %s564_s10 }
  0x60   : > { %p562_p4 = pnand %p561_p0, %p909_p7  ;;  %s566_s21 = scalar_lea.vmem %s565_s10, 64 }
  0x61   : > { %v279_v4 = vmul.f32 %v428_v2, %v271_v3  ;;  %p567_p12 = scmp.lt.s32.totalorder %s841_s28, %s565_s10  ;;  %p568_p1 = scmp.lt.s32.totalorder %s566_s21, %s560_s8 }
  0x62   : > { %p563_p10 = pneg %p562_p4 }
  0x63   : > { %280 = vst [vmem:[%s260_s6] sm:$0x3] %v279_v4  ;;  %p569_p2 = por %p568_p1, %p567_p12 }
  0x65   : > { %p570_p9 = pnand %p569_p2, %p563_p10 }
  0x67   : > { %573 = shalt.err (!%p570_p9)
}
  0x68   : > { %s574_s23 = scalar_lea.hbm %s846_s22, 32  ;;  %s578_s4 = scalar_lea.hbm %s896_s3, 64 }
  0x69   : > { %p575_p11 = scmp.ne.s32.totalorder %s846_s22, %s574_s23  ;;  %p579_p13 = scmp.lt.u32.totalorder %s846_s22, %s896_s3 }
  0x6a   : > { %p580_p5 = scmp.lt.u32.totalorder %s578_s4, %s574_s23  ;;  %p582_p0 = scmp.lt.u32.totalorder %s574_s23, %s846_s22 }
  0x6b   : > { %p576_p3 = pnand %p575_p11, %p909_p7 }
  0x6c   : > { %p581_p8 = por %p580_p5, %p579_p13 }
  0x6d   : > { %p577_p6 = pneg %p576_p3 }
  0x6e   : > { %p583_p4 = por %p582_p0, %p581_p8 }
  0x70   : > { %p584_p10 = pnand %p583_p4, %p577_p6 }
  0x72   : > { %587 = shalt.err (!%p584_p10)
}
  0x73   : > { %437 = dma.vmem_to_hbm [thread:$0]  (%p909_p7), %s841_s28, 32, %s846_s22, %s282_s7  }
  0x74 PF: > { %s309_s5 = sand.u32 1, %s626_s12   ;;  %p910_p12 = scmp.ne.s32.totalorder %s902_s27, 0 }
  0x75   : > { %p911_p1 = scmp.ge.s32.totalorder %s646_s17, 2  ;;  %s310_s6 = scalar_lea.sflag [#allocation4], %s309_s5 }
  0x77   : > { %p447_p2 = pnand %p911_p1, %p910_p12 }
  0x79   : > { %621 = dma.done.wait (!%p447_p2), %s310_s6, 32  }
  0x7a   : > { %623 = vsyncadd (!%p447_p2), %s310_s6, 4294967264  ;;  %s22_s17 = sadd.s32 1, %s646_s17   ;;  %s912_s12 = smov %s630_s13 }
  0x7b   : > { %p19_p9 = scmp.ge.s32.totalorder %s22_s17, 4   ;;  %s913_s13 = smov %s634_s14 }
  0x7c   : > { %s914_s14 = smov %s727_s26  ;;  %s915_s15 = smov %s642_s16 }
  0x7d   : > { %s916_s16 = smov %s918_s20  ;;  %21 = sbr.rel (!%p19_p9) target bundleno = 8 (0x8), region = 93 }
  0x84   :  { %315 = vsyncpa [#allocation3], 1 }
  0x85   :  { %317 = vsyncpa [#allocation3 + $0x1], 1 }
  0x86   :  { %318 = vsyncpa [#allocation6], 1 }
  0x87   :  { %320 = vsyncpa [#allocation6 + $0x1], 1 }
  0x88   :  { %321 = vsyncpa [#allocation4], 1 }
  0x89   :  { %323 = vsyncpa [#allocation4 + $0x1], 1 }

</bundles_post_ra>
